<compile_context>
chip_gen: v5e
topology: v5e:2x2
jax: 0.10.0
libtpu: 0.0.40
codegen_flags: <defaults>
</compile_context>

<pallas_src>
import functools
import numpy as np
import jax
import jax.numpy as jnp
from jax import lax
from jax.experimental import pallas as pl
from jax.experimental.pallas import tpu as pltpu

PENALTY_WEIGHT = 50.0


def _round_up(n, m):
    return ((n + m - 1) // m) * m


def _penalty_loss_kernel(x_ref, b_ref, d_ref, q_ref, p_ref, at_ref, o_ref,
                         *, batch_size, penalty_weight):
    i = pl.program_id(0)
    tb = x_ref.shape[0]

    # Row-major tiles (batch on the sublane axis); upcast narrow inputs in-kernel.
    x = x_ref[...].astype(jnp.float32)          # (TB, V)
    b = b_ref[...].astype(jnp.float32)          # (TB, I)
    d = d_ref[...].astype(jnp.float32)          # (TB, 1)
    q_row = q_ref[...]                          # (1, V)  = 0.5 * colsum(Q)
    p_row = p_ref[...]                          # (1, V)
    a_t = at_ref[...]                           # (V, I)  = A^T

    # Objective: 0.5 * x^T Q x (diagonal via column sums, 0.5 pre-folded) + p . sin(x)
    q_term = jnp.sum(q_row * x * x, axis=1, keepdims=True)          # (TB, 1)
    p_term = jnp.sum(p_row * jnp.sin(x), axis=1, keepdims=True)     # (TB, 1)

    # Constraint violation: lhs = x @ A^T (MXU, exact f32) + d*(x0 - x1) over all rows of A.
    lhs = jnp.dot(x, a_t, preferred_element_type=jnp.float32,
                  precision=lax.Precision.HIGHEST)                  # (TB, I)
    lhs = lhs + d * (x[:, 0:1] - x[:, 1:2])
    viol = jnp.sum(jnp.maximum(lhs - b, 0.0), axis=1, keepdims=True)  # (TB, 1)

    loss_col = q_term + p_term + penalty_weight * viol               # (TB, 1)

    # Mask the tail block (rows past the true batch size read garbage; zero them
    # BEFORE the block reduction so they contribute nothing).
    row = i * tb + lax.broadcasted_iota(jnp.int32, (tb, 1), 0)
    loss_col = jnp.where(row < batch_size, loss_col, 0.0)

    # Per-block partial sum (mean is finished outside the kernel).
    o_ref[...] = jnp.sum(loss_col).reshape(1, 1, 1)


def penalty_loss(x, b, d, Q, p, A, *, block_batch=4096, penalty_weight=PENALTY_WEIGHT):
    """x:(B,V) b:(B,I) d:(B,1); Q:(V,V) p:(V,) A:(I,V). Returns scalar f32 loss."""
    B, V = x.shape
    I = b.shape[1]

    # One-time tiny parameter prep (exact einsum semantics; 0.5 folded into q).
    q_row = (0.5 * jnp.sum(jnp.asarray(Q, jnp.float32), axis=0)).reshape(1, V)
    p_row = jnp.asarray(p, jnp.float32).reshape(1, V)
    a_t = jnp.asarray(A, jnp.float32).T                              # (V, I), ~KBs

    # Batch tile: big (amortize per-step overhead), multiple of 8 on the sublane axis.
    tb = min(int(block_batch), _round_up(B, 8))
    tb = max(8, (tb // 8) * 8)
    num_blocks = pl.cdiv(B, tb)

    kernel = functools.partial(
        _penalty_loss_kernel,
        batch_size=int(B),
        penalty_weight=float(penalty_weight),
    )

    # Double-buffered tiles (lane-padded to 128 in VMEM) + headroom for temporaries.
    vmem_limit = min(int(2 * 3 * tb * 128 * 4 + (16 << 20)), 48 << 20)

    cost = pl.CostEstimate(
        flops=int(2 * B * V * I + 8 * B * V + 4 * B * I),
        transcendentals=int(B * V),
        bytes_accessed=int(4 * B * (V + I + 1) + 4 * (I * V + 2 * V) + 4 * num_blocks),
    )

    partials = pl.pallas_call(
        kernel,
        out_shape=jax.ShapeDtypeStruct((num_blocks, 1, 1), jnp.float32),
        grid=(num_blocks,),
        in_specs=[
            pl.BlockSpec((tb, V), lambda i: (i, 0)),   # x tile (row-major, no transpose)
            pl.BlockSpec((tb, I), lambda i: (i, 0)),   # b tile
            pl.BlockSpec((tb, 1), lambda i: (i, 0)),   # d tile
            pl.BlockSpec((1, V), lambda i: (0, 0)),    # 0.5*colsum(Q), resident
            pl.BlockSpec((1, V), lambda i: (0, 0)),    # p, resident
            pl.BlockSpec((V, I), lambda i: (0, 0)),    # A^T, resident
        ],
        out_specs=pl.BlockSpec((1, 1, 1), lambda i: (i, 0, 0)),   # per-block partials
        compiler_params=pltpu.CompilerParams(
            dimension_semantics=("parallel",),          # blocks are independent -> both TCs on v7x
            vmem_limit_bytes=vmem_limit,
        ),
        cost_estimate=cost,
    )(x, b, d, q_row, p_row, a_t)

    return jnp.sum(partials) * jnp.float32(1.0 / B)


def _reference(x, b, d, Q, p, A):
    """Pure numpy reference mirroring the PyTorch forward (d has shape (B, 1))."""
    x = np.asarray(x, np.float32)
    b = np.asarray(b, np.float32)
    d = np.asarray(d, np.float32)            # (B, 1) -> broadcasts like torch
    Q = np.asarray(Q, np.float32)
    p = np.asarray(p, np.float32)
    A = np.asarray(A, np.float32)
    q_term = np.einsum('bm,nm,bm->b', x, Q, x) / 2
    p_term = np.einsum('m,bm->b', p, np.sin(x))
    pert_A = np.broadcast_to(A[None], (x.shape[0],) + A.shape).copy()
    pert_A[:, :, 0] += d                     # (B, I) += (B, 1)
    pert_A[:, :, 1] -= d
    lhs = np.einsum('bmn,bn->bm', pert_A, x)
    viol = np.maximum(lhs - b, 0.0).sum(axis=1)
    return float(np.mean(q_term + p_term + PENALTY_WEIGHT * viol))


if __name__ == "__main__":
    batch, num_var, num_ineq = 8, 32, 16

    # Deterministic parameter init, matching the module's __init__.
    rng = np.random.RandomState(17)
    Q = (0.01 * np.diag(rng.random(size=num_var))).astype(np.float32)
    p = (0.1 * rng.random(num_var)).astype(np.float32)
    A = rng.normal(scale=0.1, size=(num_ineq, num_var)).astype(np.float32)

    # Deterministic example inputs.
    key = jax.random.PRNGKey(0)
    kx, kb, kd = jax.random.split(key, 3)
    x = jax.random.normal(kx, (batch, num_var), dtype=jnp.float32)
    b = jax.random.normal(kb, (batch, num_ineq), dtype=jnp.float32)
    d = jax.random.uniform(kd, (batch, 1), dtype=jnp.float32)  # per-sample perturbation

    loss = penalty_loss(x, b, d, jnp.asarray(Q), jnp.asarray(p), jnp.asarray(A))
    loss = jax.block_until_ready(loss)

    ref = _reference(np.asarray(x), np.asarray(b), np.asarray(d), Q, p, A)
    assert abs(float(loss) - ref) <= 1e-4 * (1.0 + abs(ref)), (float(loss), ref)
    print("KERNEL_OK")
</pallas_src>

<mosaic_0001>
module attributes {stable_mosaic.version = 11 : i64} {
  func.func @_penalty_loss_kernel(%arg0: i32, %arg1: memref<8x32xf32, #tpu.memory_space<vmem>>, %arg2: memref<8x16xf32, #tpu.memory_space<vmem>>, %arg3: memref<8x1xf32, #tpu.memory_space<vmem>>, %arg4: memref<1x32xf32, #tpu.memory_space<vmem>>, %arg5: memref<1x32xf32, #tpu.memory_space<vmem>>, %arg6: memref<32x16xf32, #tpu.memory_space<vmem>>, %arg7: memref<1x1x1xf32, #tpu.memory_space<vmem>>) attributes {dimension_semantics = [#tpu.dimension_semantics<parallel>], iteration_bounds = array<i64: 1>, scalar_prefetch = 0 : i64, scratch_operands = 0 : i64, tpu.core_type = #tpu.core_type<tc>, window_params = [{transform_indices = @transform_0, window_bounds = array<i64: 8, 32>}, {transform_indices = @transform_1, window_bounds = array<i64: 8, 16>}, {transform_indices = @transform_2, window_bounds = array<i64: 8, 1>}, {pipeline_mode = #tpu.pipeline_mode<synchronous>, transform_indices = @transform_3, window_bounds = array<i64: 1, 32>}, {pipeline_mode = #tpu.pipeline_mode<synchronous>, transform_indices = @transform_4, window_bounds = array<i64: 1, 32>}, {pipeline_mode = #tpu.pipeline_mode<synchronous>, transform_indices = @transform_5, window_bounds = array<i64: 32, 16>}, {transform_indices = @transform_6, window_bounds = array<i64: 1, 1, 1>}]} {
    %c0 = arith.constant 0 : index
    %c0_0 = arith.constant 0 : index
    %0 = vector.load %arg1[%c0, %c0_0] : memref<8x32xf32, #tpu.memory_space<vmem>>, vector<8x32xf32>
    %c0_1 = arith.constant 0 : index
    %c0_2 = arith.constant 0 : index
    %1 = vector.load %arg2[%c0_1, %c0_2] : memref<8x16xf32, #tpu.memory_space<vmem>>, vector<8x16xf32>
    %c0_3 = arith.constant 0 : index
    %c0_4 = arith.constant 0 : index
    %2 = vector.load %arg3[%c0_3, %c0_4] : memref<8x1xf32, #tpu.memory_space<vmem>>, vector<8x1xf32>
    %c0_5 = arith.constant 0 : index
    %c0_6 = arith.constant 0 : index
    %3 = vector.load %arg4[%c0_5, %c0_6] : memref<1x32xf32, #tpu.memory_space<vmem>>, vector<1x32xf32>
    %c0_7 = arith.constant 0 : index
    %c0_8 = arith.constant 0 : index
    %4 = vector.load %arg5[%c0_7, %c0_8] : memref<1x32xf32, #tpu.memory_space<vmem>>, vector<1x32xf32>
    %c0_9 = arith.constant 0 : index
    %c0_10 = arith.constant 0 : index
    %5 = vector.load %arg6[%c0_9, %c0_10] : memref<32x16xf32, #tpu.memory_space<vmem>>, vector<32x16xf32>
    %6 = vector.broadcast %3 : vector<1x32xf32> to vector<8x32xf32>
    %7 = arith.mulf %6, %0 : vector<8x32xf32>
    %8 = arith.mulf %7, %0 : vector<8x32xf32>
    %cst = arith.constant dense<0.000000e+00> : vector<8xf32>
    %9 = vector.multi_reduction <add>, %8, %cst [1] : vector<8x32xf32> to vector<8xf32>
    %10 = vector.shape_cast %9 : vector<8xf32> to vector<8x1xf32>
    %11 = math.sin %0 : vector<8x32xf32>
    %12 = vector.broadcast %4 : vector<1x32xf32> to vector<8x32xf32>
    %13 = arith.mulf %12, %11 : vector<8x32xf32>
    %cst_11 = arith.constant dense<0.000000e+00> : vector<8xf32>
    %14 = vector.multi_reduction <add>, %13, %cst_11 [1] : vector<8x32xf32> to vector<8xf32>
    %15 = vector.shape_cast %14 : vector<8xf32> to vector<8x1xf32>
    %cst_12 = arith.constant dense<0.000000e+00> : vector<8x16xf32>
    %16 = tpu.matmul %0, %5, %cst_12 {dimension_numbers = #tpu.dot_dimension_numbers<[1], [0], [0], [1], [0, 0, 1, 1], [], []>, precision = #tpu.contract_precision<fp32>} : vector<8x32xf32>, vector<32x16xf32>, vector<8x16xf32> -> vector<8x16xf32>
    %17 = vector.extract_strided_slice %0 {offsets = [0, 0], sizes = [8, 1], strides = [1, 1]} : vector<8x32xf32> to vector<8x1xf32>
    %18 = vector.extract_strided_slice %0 {offsets = [0, 1], sizes = [8, 1], strides = [1, 1]} : vector<8x32xf32> to vector<8x1xf32>
    %19 = arith.subf %17, %18 : vector<8x1xf32>
    %20 = arith.mulf %2, %19 : vector<8x1xf32>
    %21 = vector.broadcast %20 : vector<8x1xf32> to vector<8x16xf32>
    %22 = arith.addf %16, %21 : vector<8x16xf32>
    %23 = arith.subf %22, %1 : vector<8x16xf32>
    %cst_13 = arith.constant 0.000000e+00 : f32
    %24 = vector.broadcast %cst_13 : f32 to vector<8x16xf32>
    %25 = arith.maximumf %23, %24 : vector<8x16xf32>
    %cst_14 = arith.constant dense<0.000000e+00> : vector<8xf32>
    %26 = vector.multi_reduction <add>, %25, %cst_14 [1] : vector<8x16xf32> to vector<8xf32>
    %27 = vector.shape_cast %26 : vector<8xf32> to vector<8x1xf32>
    %28 = arith.addf %10, %15 : vector<8x1xf32>
    %cst_15 = arith.constant 5.000000e+01 : f32
    %29 = vector.broadcast %cst_15 : f32 to vector<8x1xf32>
    %30 = arith.mulf %29, %27 : vector<8x1xf32>
    %31 = arith.addf %28, %30 : vector<8x1xf32>
    %c8_i32 = arith.constant 8 : i32
    %32 = arith.muli %arg0, %c8_i32 : i32
    %33 = tpu.iota {dimensions = array<i32: 0>} : vector<8x1xi32>
    %34 = vector.broadcast %32 : i32 to vector<8x1xi32>
    %35 = arith.addi %34, %33 : vector<8x1xi32>
    %c8_i32_16 = arith.constant 8 : i32
    %36 = vector.broadcast %c8_i32_16 : i32 to vector<8x1xi32>
    %37 = arith.cmpi slt, %35, %36 : vector<8x1xi32>
    %cst_17 = arith.constant 0.000000e+00 : f32
    %38 = vector.broadcast %cst_17 : f32 to vector<8x1xf32>
    %39 = arith.select %37, %31, %38 : vector<8x1xi1>, vector<8x1xf32>
    %40 = vector.shape_cast %39 : vector<8x1xf32> to vector<1x8x1xf32>
    %cst_18 = arith.constant dense<0.000000e+00> : vector<1xf32>
    %41 = vector.multi_reduction <add>, %40, %cst_18 [1, 2] : vector<1x8x1xf32> to vector<1xf32>
    %42 = vector.shape_cast %41 : vector<1xf32> to vector<1x1x1xf32>
    %43 = vector.extract %42[0, 0, 0] : f32 from vector<1x1x1xf32>
    %44 = vector.broadcast %43 : f32 to vector<1x1x1xf32>
    %c0_19 = arith.constant 0 : index
    %c0_20 = arith.constant 0 : index
    %c0_21 = arith.constant 0 : index
    %45 = vector.load %arg7[%c0_19, %c0_20, %c0_21] : memref<1x1x1xf32, #tpu.memory_space<vmem>>, vector<1x1x1xf32>
    tpu.vector_store %arg7[%c0_19, %c0_20, %c0_21], %44 {strides = array<i32>} : memref<1x1x1xf32, #tpu.memory_space<vmem>>, vector<1x1x1xf32>,
    return
  }
  func.func @transform_0(%arg0: i32) -> (i32, i32) {
    %c0_i32 = arith.constant 0 : i32
    %c0_i32_0 = arith.constant 0 : i32
    return %arg0, %c0_i32 : i32, i32
  }
  func.func @transform_1(%arg0: i32) -> (i32, i32) {
    %c0_i32 = arith.constant 0 : i32
    %c0_i32_0 = arith.constant 0 : i32
    return %arg0, %c0_i32 : i32, i32
  }
  func.func @transform_2(%arg0: i32) -> (i32, i32) {
    %c0_i32 = arith.constant 0 : i32
    %c0_i32_0 = arith.constant 0 : i32
    return %arg0, %c0_i32 : i32, i32
  }
  func.func @transform_3(%arg0: i32) -> (i32, i32) {
    %c0_i32 = arith.constant 0 : i32
    %c0_i32_0 = arith.constant 0 : i32
    %c0_i32_1 = arith.constant 0 : i32
    return %c0_i32, %c0_i32_0 : i32, i32
  }
  func.func @transform_4(%arg0: i32) -> (i32, i32) {
    %c0_i32 = arith.constant 0 : i32
    %c0_i32_0 = arith.constant 0 : i32
    %c0_i32_1 = arith.constant 0 : i32
    return %c0_i32, %c0_i32_0 : i32, i32
  }
  func.func @transform_5(%arg0: i32) -> (i32, i32) {
    %c0_i32 = arith.constant 0 : i32
    %c0_i32_0 = arith.constant 0 : i32
    %c0_i32_1 = arith.constant 0 : i32
    return %c0_i32, %c0_i32_0 : i32, i32
  }
  func.func @transform_6(%arg0: i32) -> (i32, i32, i32) {
    %c0_i32 = arith.constant 0 : i32
    %c0_i32_0 = arith.constant 0 : i32
    %c0_i32_1 = arith.constant 0 : i32
    return %arg0, %c0_i32, %c0_i32_0 : i32, i32, i32
  }
}

</mosaic_0001>

<bundles_post_ra>
// kernel: tpu_custom_call.1
= control target key start
LH: loop header
LB: loop body
LE: loop exit
PB: predicated region body
PF: predicated region fallthrough
CT: control target
= control target key end

     0   :  { %vm38_vm0 = vcmask 261120   ;;  %s491_s27 = smov 127   ;;  %s650_s0 = inlined_call_operand.vmem [shape: f32[8,32], index: 0, kind: input, shape index: {}]   ;;  %s651_s1 = inlined_call_operand.vmem [shape: f32[8,16], index: 1, kind: input, shape index: {}]   ;;  %s652_s2 = inlined_call_operand.vmem [shape: f32[8,1], index: 2, kind: input, shape index: {}]   ;;  %s653_s3 = inlined_call_operand.vmem [shape: f32[1,32], index: 3, kind: input, shape index: {}]   ;;  %s654_s4 = inlined_call_operand.vmem [shape: f32[1,32], index: 4, kind: input, shape index: {}]   ;;  %s655_s5 = inlined_call_operand.vmem [shape: f32[32,16], index: 5, kind: input, shape index: {}]   ;;  %s656_s6 = inlined_call_operand.hbm [shape: f32[1,1,1], index: 6, kind: output, shape index: {}]  }
   0x1   :  { %v538_v0 = vld [vmem:[%s650_s0] sm:$0xff]  ;;  %v32_v1 = vld [vmem:[%s655_s5 + $0x18] sm:$0xff]  ;;  %v31_v2 = vld [vmem:[%s655_s5 + $0x10] sm:$0xff] }
   0x2   :  { %205 = vrot.lane.b32.xlu0 %v538_v0, %s491_s27  ;;  %v229_v3 = vand.u32 4294901760, %v32_v1  ;;  %v231_v4 = vand.u32 4294901760, %v31_v2  ;;  %v30_v5 = vld [vmem:[%s655_s5 + $0x8] sm:$0xff]  ;;  %v29_v6 = vld [vmem:[%s655_s5] sm:$0xff]  ;;  %v215_v7 = vsel %vm38_vm0, %v538_v0, 0 }
   0x3   :  { %v233_v8 = vand.u32 4294901760, %v30_v5  ;;  %v235_v9 = vand.u32 4294901760, %v29_v6  ;;  %v237_v10 = vand.u32 4294901760, %v215_v7 }
   0x4   :  { %v259_v11 = vsub.f32 %v32_v1, %v229_v3  ;;  %230 = vmatpush.msra.mxu0 %v229_v3  ;;  %v265_v12 = vsub.f32 %v31_v2, %v231_v4  ;;  %330 = vmatpush.msra.mxu3 %v229_v3 }
   0x5   :  { %11 = vsyncpa [#allocation3], 0  ;;  %v271_v13 = vsub.f32 %v30_v5, %v233_v8  ;;  %v277_v14 = vsub.f32 %v29_v6, %v235_v9  ;;  %v238_v15 = vsub.f32 %v215_v7, %v237_v10  ;;  %v45_v31 = vand.u32 2139095040, %v538_v0  ;;  %s439_s14 = sshll.u32 %s656_s6, 4  ;;  %s440_s14 = int_to_ptr.hbm [resolvable:$true] %s439_s14 }
   0x6   :  { %301 = vmatpush.msra.mxu2 %v259_v11  ;;  %232 = vmatpush.msra.mxu0 %v231_v4  ;;  %v260_v16 = vand.u32 4294901760, %v259_v11  ;;  %v266_v17 = vand.u32 4294901760, %v265_v12  ;;  %v492_v32 = vmov 0   ;;  %v42_v38 = vand.u32 2147483647, %v538_v0 }
   0x7   :  { %332 = vmatpush.msra.mxu3 %v231_v4  ;;  %v272_v18 = vand.u32 4294901760, %v271_v13  ;;  %v239_v19 = vand.u32 4294901760, %v238_v15  ;;  %v278_v20 = vand.u32 4294901760, %v277_v14  ;;  %462 = vset.pattern.permute.xlu0 %v492_v32  ;;  %v46_v33 = vshrl.u32 %v45_v31, 23 }
   0x8   :  { %304 = vmatpush.msra.mxu2 %v265_v12  ;;  %v261_v21 = vsub.f32 %v259_v11, %v260_v16  ;;  %234 = vmatpush.msra.mxu0 %v233_v8  ;;  %v267_v22 = vsub.f32 %v265_v12, %v266_v17  ;;  %v493_v41 = vmov 683565275   ;;  %v494_v43 = vmov 2475754826   ;;  %v26_v12 = vld [vmem:[%s652_s2] sm:$0xff] }
   0x9   :  { %334 = vmatpush.msra.mxu3 %v233_v8  ;;  %v273_v23 = vsub.f32 %v271_v13, %v272_v18  ;;  %v240_v24 = vsub.f32 %v238_v15, %v239_v19  ;;  %v279_v27 = vsub.f32 %v277_v14, %v278_v20  ;;  %v448_v34 = vadd.s32 4294967169, %v46_v33 }
   0xa   :  { %v262_v25 = vand.u32 4294901760, %v261_v21  ;;  %307 = vmatpush.msra.mxu2 %v271_v13  ;;  %v268_v26 = vand.u32 4294901760, %v267_v22  ;;  %236 = vmatpush.msra.mxu0 %v235_v9  ;;  %v495_v45 = vmov 2102212464   ;;  %v496_v47 = vmov 920167782  }
   0xb   :  { %336 = vmatpush.msra.mxu3 %v235_v9  ;;  %v241_v28 = vand.u32 4294901760, %v240_v24  ;;  %v274_v29 = vand.u32 4294901760, %v273_v23  ;;  %v280_v30 = vand.u32 4294901760, %v279_v27  ;;  %v52_v35 = vadd.s32 1, %v448_v34 }
   0xc   :  { %359 = vmatpush.msrb.mxu0 %v260_v16  ;;  %263 = vmatpush.msra.mxu1 %v262_v25  ;;  %v497_v50 = vmov 2131351028   ;;  %v498_v55 = vmov 1326507024   ;;  %v49_v57 = vand.u32 8388607, %v42_v38 }
   0xd   :  { %310 = vmatpush.msra.mxu2 %v277_v14  ;;  %242 = vmatmul.f32.vlgmr.msra.gmra.mxu0 %v241_v28  ;;  %vm53_vm1 = vcmp.gt.s32.totalorder %v52_v35, 0  ;;  %vm44_vm13 = vcmp.lt.s32.totalorder %v538_v0, 0  ;;  %vm620_vm14 = vcmp.le.f32.partialorder %v42_v38, 0.7853982  ;;  %v463_v38 = vld [vmem:[%s653_s3] ss:$0 sm:$0xff] }
   0xe   :  { %313 = vmatmul.f32.vlgmr.msra.gmra.mxu2 %v238_v15  ;;  %269 = vmatpush.msra.mxu1 %v268_v26  ;;  %v54_v36 = vsel %vm53_vm1, %v52_v35, 0  ;;  %v50_v1 = vor.u32 8388608, %v49_v57 }
   0xf   :  { %340 = vmatmul.f32.vlgmr.msra.gmra.mxu3 %v239_v19  ;;  %363 = vmatpush.msrb.mxu0 %v266_v17  ;;  %v56_v37 = vand.u32 31, %v54_v36  ;;  %v558_v39 = vshrl.u32 %v54_v36, 5 }
  0x10   :  { %275 = vmatpush.msra.mxu1 %v274_v29  ;;  %v90_v7 = vshll.u32 %v50_v1, 8 }
  0x11   :  { %367 = vmatpush.msrb.mxu0 %v272_v18  ;;  %v560_v40 = vsub.s32 32, %v56_v37  ;;  %v59_v42 = vshll.u32 %v493_v41, %v56_v37  ;;  %v62_v44 = vshll.u32 %v494_v43, %v56_v37  ;;  %v68_v46 = vshll.u32 %v495_v45, %v56_v37 }
  0x12   :  { %281 = vmatpush.msra.mxu1 %v280_v30  ;;  %v71_v48 = vshll.u32 %v496_v47, %v56_v37  ;;  %v65_v52 = vshll.u32 %v497_v50, %v56_v37  ;;  %vm77_vm2 = vcmp.lt.s32.totalorder %v558_v39, 4  ;;  %vm74_vm3 = vcmp.lt.s32.totalorder %v558_v39, 1 }
  0x13   :  { %283 = vmatmul.f32.vlgmr.msra.gmra.mxu1 %v237_v10  ;;  %371 = vmatpush.msrb.mxu0 %v278_v20  ;;  %v60_v49 = vshrl.u32 %v494_v43, %v560_v40  ;;  %v63_v51 = vshrl.u32 %v497_v50, %v560_v40  ;;  %v66_v53 = vshrl.u32 %v495_v45, %v560_v40  ;;  %vm76_vm4 = vcmp.lt.s32.totalorder %v558_v39, 3 }
  0x14   :  { %390 = vmatpush.msrb.mxu1 %v229_v3  ;;  %v69_v54 = vshrl.u32 %v496_v47, %v560_v40  ;;  %v72_v56 = vshrl.u32 %v498_v55, %v560_v40  ;;  %vm75_vm5 = vcmp.lt.s32.totalorder %v558_v39, 2  ;;  %v92_v17 = vshrl.u32 %v90_v7, 16 }
  0x15   :  { %373 = vmatmul.f32.vlgmr.msrb.gmra.mxu0 %v237_v10  ;;  %v571_v60 = vor.u32 %v60_v49, %v59_v42  ;;  %v573_v61 = vor.u32 %v63_v51, %v62_v44  ;;  %v67_v62 = vor.u32 %v66_v53, %v65_v52  ;;  %v58_v51 = vshrl.u32 %v493_v41, %v560_v40 }
  0x16   :  { %392 = vmatpush.msrb.mxu1 %v231_v4  ;;  %v70_v58 = vor.u32 %v69_v54, %v68_v46  ;;  %v73_v59 = vor.u32 %v72_v56, %v71_v48 }
  0x17   :  { %v82_v3 = vsel %vm74_vm3, %v571_v60, %v573_v61  ;;  %v86_v5 = vsel %vm74_vm3, %v573_v61, %v67_v62  ;;  %v79_v54 = vsel %vm77_vm2, %v67_v62, 2102212464  ;;  %v78_v56 = vsel %vm74_vm3, %v58_v51, %v571_v60 }
  0x18   :  { %394 = vmatpush.msrb.mxu1 %v233_v8  ;;  %v83_v63 = vsel %vm77_vm2, %v70_v58, 920167782  ;;  %v87_v2 = vsel %vm77_vm2, %v73_v59, 1326507024  ;;  %vm185_vm3 = vweird.f32 %v538_v0 }
  0x19   :  { %v84_v4 = vsel %vm76_vm4, %v67_v62, %v83_v63  ;;  %v88_v6 = vsel %vm76_vm4, %v70_v58, %v87_v2 }
  0x1a   :  { %396 = vmatpush.msrb.mxu1 %v235_v9  ;;  %v85_v8 = vsel %vm75_vm5, %v82_v3, %v84_v4  ;;  %v89_v9 = vsel %vm75_vm5, %v86_v5, %v88_v6 }
  0x1b   :  { %398 = vmatmul.f32.vlgmr.msrb.gmra.mxu1 %v237_v10  ;;  %v91_v10 = vand.u32 65535, %v90_v7  ;;  %v116_v11 = vshrl.u32 %v85_v8, 16  ;;  %v94_v14 = vshrl.u32 %v89_v9, 16  ;;  %v115_v18 = vand.u32 65535, %v85_v8 }
  0x1c   :  { %v93_v20 = vand.u32 65535, %v89_v9 }
  0x1d   :  { %v118_v19 = vmul.u32 %v116_v11, %v91_v10  ;;  %v96_v21 = vmul.u32 %v94_v14, %v91_v10  ;;  %v117_v22 = vmul.u32 %v115_v18, %v91_v10  ;;  %v119_v23 = vmul.u32 %v115_v18, %v92_v17 }
  0x1e   :  { %v95_v25 = vmul.u32 %v93_v20, %v91_v10  ;;  %v97_v26 = vmul.u32 %v93_v20, %v92_v17  ;;  %v120_v33 = vmul.u32 %v116_v11, %v92_v17  ;;  %v98_v34 = vmul.u32 %v94_v14, %v92_v17 }
  0x1f   :  { %v121_v24 = vshll.u32 %v118_v19, 16  ;;  %v99_v27 = vshll.u32 %v96_v21, 16  ;;  %v123_v28 = vshll.u32 %v119_v23, 16  ;;  %v122_v45 = vshrl.u32 %v118_v19, 16 }
  0x20   :  { %v101_v30 = vshll.u32 %v97_v26, 16  ;;  %v100_v47 = vshrl.u32 %v96_v21, 16  ;;  %v124_v49 = vshrl.u32 %v119_v23, 16  ;;  %v102_v52 = vshrl.u32 %v97_v26, 16 }
  0x21   :  { %vm125_vm6 = vc.u32 %v117_v22, %v121_v24  ;;  %v127_v29 = vadd.s32 %v121_v24, %v117_v22  ;;  %vm103_vm7 = vc.u32 %v95_v25, %v99_v27  ;;  %v105_v31 = vadd.s32 %v99_v27, %v95_v25 }
  0x22   :  { %v126_v35 = vsel %vm125_vm6, 1, %v492_v32  ;;  %v104_v36 = vsel %vm103_vm7, 1, %v492_v32 }
  0x23   :  { %vm129_vm8 = vc.u32 %v127_v29, %v123_v28  ;;  %vm107_vm9 = vc.u32 %v105_v31, %v101_v30  ;;  %v128_v37 = vadd.s32 %v126_v35, %v120_v33  ;;  %v106_v42 = vadd.s32 %v104_v36, %v98_v34 }
  0x24   :  { %v130_v43 = vsel %vm129_vm8, 1, %v492_v32  ;;  %v108_v44 = vsel %vm107_vm9, 1, %v492_v32  ;;  %v80_v32 = vsel %vm76_vm4, %v573_v61, %v79_v54  ;;  %v131_v58 = vadd.s32 %v127_v29, %v123_v28 }
  0x25   :  { %v132_v46 = vadd.s32 %v130_v43, %v128_v37  ;;  %v110_v48 = vadd.s32 %v108_v44, %v106_v42  ;;  %v81_v59 = vsel %vm75_vm5, %v78_v56, %v80_v32  ;;  %v36_v35 = vmul.f32 %v463_v38, %v538_v0 }
  0x26   :  { %v135_v41 = vmul.u32 %v90_v7, %v81_v59  ;;  %vm418_vm4 = vcmask 7168   ;;  %vm430_vm5 = vcmask 0  }
  0x27   :  { %v133_v50 = vadd.s32 %v132_v46, %v122_v45  ;;  %v111_v53 = vadd.s32 %v110_v48, %v100_v47  ;;  %v37_v44 = vmul.f32 %v36_v35, %v538_v0 }
  0x29   :  { %v134_v55 = vadd.s32 %v133_v50, %v124_v49  ;;  %v112_v57 = vadd.s32 %v111_v53, %v102_v52  ;;  %v39_v48 = vsel %vm38_vm0, %v37_v44, 0.0 }
  0x2a   :  { %40 = vadd.xlane.f32.xlu1 %v39_v48 }
  0x2b   :  { %v138_v40 = vadd.s32 1, %v134_v55  ;;  %vm137_vm10 = vc.u32 %v112_v57, %v131_v58  ;;  %v136_v9 = vadd.s32 %v131_v58, %v112_v57 }
  0x2d   :  { %v139_v63 = vsel %vm137_vm10, %v138_v40, %v134_v55  ;;  %v464_v55 = vld [vmem:[%s654_s4] ss:$0 sm:$0xff] }
  0x2e   :  { %v140_v1 = vadd.s32 %v139_v63, %v135_v41 }
  0x30   :  { %v141_v62 = vadd.s32 536870912, %v140_v1 }
  0x32   :  { %v142_v2 = vshrl.u32 %v141_v62, 30 }
  0x34   :  { %v143_v3 = vshll.u32 %v142_v2, 30  ;;  %v166_v31 = vsub.s32 4, %v142_v2 }
  0x36   :  { %v144_v4 = vsub.s32 %v140_v1, %v143_v3  ;;  %v167_v36 = vsel %vm44_vm13, %v166_v31, %v142_v2 }
  0x37   :  { %v169_v37 = vsel %vm620_vm14, 0, %v167_v36 }
  0x38   :  { %v146_v5 = vsub.s32 0, %v144_v4  ;;  %vm145_vm11 = vcmp.lt.s32.totalorder %v144_v4, 0  ;;  %v186_v45 = vadd.s32 3, %v169_v37 }
  0x3a   :  { %v147_v60 = vsel %vm145_vm11, %v146_v5, %v144_v4  ;;  %v187_v49 = vand.u32 3, %v186_v45 }
  0x3b   :  { %v148_v6 = vclz %v147_v60  ;;  %v25_v60 = vld [vmem:[%s651_s1] sm:$0xff]  ;;  %s499_s1 = smov [#allocation2]  }
  0x3c   :  { %vm189_vm15 = vcmp.eq.s32.totalorder %v187_v49, 0  ;;  %vm192_vm1 = vcmp.eq.s32.totalorder %v187_v49, 2  ;;  %vm188_vm2 = vcmp.lt.s32.totalorder %v187_v49, 2  ;;  %s437_s4 = sshll.u32 %s499_s1, 4  ;;  %s438_s4 = int_to_ptr.vmem [resolvable:$true] %s437_s4 }
  0x3d   :  { %v449_v8 = vadd.s32 4294967294, %v148_v6 }
  0x3f   :  { %vm450_vm12 = vcmp.lt.s32.totalorder %v449_v8, 0 }
  0x40   :  { %v151_v61 = vsel %vm450_vm12, 0, %v449_v8 }
  0x41   :  { %v156_v10 = vsub.s32 4294967266, %v151_v61  ;;  %v152_v39 = vsub.s32 32, %v151_v61 }
  0x43   :  { %v157_v11 = vadd.s32 127, %v156_v10 }
  0x45   :  { %v158_v7 = vshll.u32 %v157_v11, 23 }
  0x74   :  { %v206_v13 = vpop.permute.xlu0 %205 }
  0x75   :  { %v208_v15 = vsub.f32 %v538_v0, %v206_v13  ;;  %v154_v13 = vshrl.u32 %v136_v9, %v152_v39 }
  0x77   :  { %v209_v16 = vmul.f32 %v208_v15, %v26_v12  ;;  %v153_v12 = vshll.u32 %v144_v4, %v151_v61  ;;  %v159_v15 = vor.u32 4788187, %v158_v7 }
  0x79   :  { %212 = vperm.xlu0 %462, %v209_v16   ;;  %v155_v14 = vor.u32 %v154_v13, %v153_v12  ;;  %v160_v16 = vand.u32 2147483647, %v159_v15 }
  0x7b   :  { %v162_v17 = vcvt.s32.f32 %v155_v14 }
  0x7d   :  { %v163_v18 = vmul.f32 %v162_v17, %v160_v16 }
  0x7f   :  { %v164_v19 = vxor.u32 2147483648, %v163_v18 }
  0x81   :  { %v165_v21 = vsel %vm44_vm13, %v164_v19, %v163_v18 }
  0x82   :  { %v168_v22 = vsel %vm620_vm14, %v538_v0, %v165_v21 }
  0x83   :  { %v170_v23 = vmul.f32 %v168_v22, %v168_v22 }
  0x85   :  { %v178_v24 = vmul.f32 -0.00019511016, %v170_v23  ;;  %v171_v25 = vmul.f32 -0.001358992, %v170_v23 }
  0x87   :  { %v179_v26 = vadd.f32 0.008332121, %v178_v24  ;;  %v172_v27 = vadd.f32 0.041655596, %v171_v25 }
  0x89   :  { %v180_v28 = vmul.f32 %v179_v26, %v170_v23  ;;  %v173_v29 = vmul.f32 %v172_v27, %v170_v23 }
  0x8a   :  { %v243_v58 = vpop.f32.mrf.mxu0 }
  0x8b   :  { %v181_v30 = vadd.f32 -0.16666654, %v180_v28  ;;  %v174_v33 = vadd.f32 -0.4999988, %v173_v29 }
  0x8d   :  { %v182_v34 = vmul.f32 %v181_v30, %v170_v23  ;;  %v175_v42 = vmul.f32 %v174_v33, %v170_v23 }
  0x8f   :  { %v183_v43 = vadd.f32 1.0, %v182_v34  ;;  %v176_v46 = vadd.f32 1.0, %v175_v42 }
  0x90   :  { %v284_v59 = vpop.f32.mrf.mxu1 }
  0x91   :  { %v184_v47 = vmul.f32 %v183_v43, %v168_v22  ;;  %v193_v51 = vxor.u32 2147483648, %v176_v46  ;;  %v314_v63 = vpop.f32.mrf.mxu2 }
  0x92   :  { %v341_v62 = vpop.f32.mrf.mxu3  ;;  %v374_v3 = vpop.f32.mrf.mxu0 }
  0x93   :  { %v190_v50 = vxor.u32 2147483648, %v184_v47  ;;  %v194_v53 = vsel %vm192_vm1, %v193_v51, %v184_v47 }
  0x95   :  { %v191_v52 = vsel %vm189_vm15, %v176_v46, %v190_v50 }
  0x96   :  { %v195_v54 = vsel %vm188_vm2, %v191_v52, %v194_v53 }
  0x97   :  { %v196_v56 = vsel %vm185_vm3, nan, %v195_v54 }
  0x98   :  { %v200_v32 = vmul.f32 %v464_v55, %v196_v56  ;;  %v399_v4 = vpop.f32.mrf.mxu1 }
  0x9a   :  { %v201_v57 = vsel %vm38_vm0, %v200_v32, 0.0  ;;  %vm404_vm0 = vcmask 130048  }
  0x9b   :  { %202 = vadd.xlane.f32.xlu1 %v201_v57 }
  0x9d   :  { %v41_v10 = vpop.xlane.xlu1 %40 }
  0xeb   :  { %v213_v40 = vpop.permute.xlu0 %212 }
  0xec   :  { %v244_v41 = vadd.f32 %v243_v58, %v213_v40 }
  0xee   :  { %v285_v1 = vadd.f32 %v284_v59, %v244_v41 }
  0xf0   :  { %v315_v2 = vadd.f32 %v314_v63, %v285_v1 }
  0xf2   :  { %v342_v0 = vadd.f32 %v341_v62, %v315_v2 }
  0xf4   :  { %v375_v5 = vadd.f32 %v374_v3, %v342_v0 }
  0xf6   :  { %v400_v6 = vadd.f32 %v399_v4, %v375_v5 }
  0xf8   :  { %v402_v8 = vsub.f32 %v400_v6, %v25_v60 }
  0xfa   :  { %v403_v61 = vmax.f32 %v402_v8, 0.0 }
  0xfc   :  { %v405_v9 = vsel %vm404_vm0, %v403_v61, 0.0 }
  0xfd   :  { %406 = vadd.xlane.f32.xlu2 %v405_v9 }
 0x10e   :  { %v203_v39 = vpop.xlane.xlu1 %202 }
 0x10f   :  { %v408_v12 = vadd.f32 %v203_v39, %v41_v10 }
 0x170   :  { %v407_v11 = vpop.xlane.xlu2 %406 }
 0x171   :  { %v409_v13 = vmul.f32 50.0, %v407_v11 }
 0x173   :  { %v410_v7 = vadd.f32 %v409_v13, %v408_v12 }
 0x175   :  { %v419_v14 = vsel %vm418_vm4, %v410_v7, 0.0 }
 0x176   :  { %420 = vadd.xlane.f32.xlu2 %v419_v14 }
 0x1e9   :  { %v421_v15 = vpop.xlane.xlu2 %420 }
 0x1ea   :  { %v422_v16 = vrot.slane %v421_v15, 4 }
 0x1ec   :  { %v423_v17 = vadd.f32 %v422_v16, %v421_v15 }
 0x1ee   :  { %v424_v18 = vrot.slane %v423_v17, 2 }
 0x1f0   :  { %v425_v19 = vadd.f32 %v424_v18, %v423_v17 }
 0x1f2   :  { %v426_v20 = vrot.slane %v425_v19, 1 }
 0x1f4   :  { %v427_v21 = vadd.f32 %v426_v20, %v425_v19 }
 0x1f6   :  { %451 = vpush %v427_v21 }
 0x227   :  { %s452_s15 = spop %451 }
 0x228   :  { %v429_v22 = vstv %s452_s15 }
 0x229   :  { %431 = vst.msk [vmem:[#allocation2] sm:$0x1] %vm430_vm5, %v429_v22 }
 0x22a   :  { %442 = dma.vmem_to_hbm [thread:$0]  %s438_s4, 16, %s440_s14, [#allocation3]  }
 0x22b   :  { %489 = dma.done.wait [#allocation3], 16  }
 0x22c   :  { %490 = vsyncadd [#allocation3], 4294967280 }
 0x22d   :  { %447 = vsyncpa [#allocation3], 1 }

</bundles_post_ra>
